<compile_context>
chip_gen: v5e
topology: v5e:2x2
jax: 0.10.0
libtpu: 0.0.40
codegen_flags: <defaults>
</compile_context>

<pallas_src>
import functools
import math

import jax
import jax.numpy as jnp
from jax import lax
from jax.experimental import pallas as pl
from jax.experimental.pallas import tpu as pltpu


# ---------------------------------------------------------------------------
# Tile selection
# ---------------------------------------------------------------------------
def _round_down_128(v: int) -> int:
    return max(128, (v // 128) * 128)


def _proj_lane_tile(n: int, rows: int, budget_bytes: int = 12 << 20,
                    cap: int = 8192) -> int:
    """Lane (spatial) tile for the mem-bound 1x1-conv projection kernel.

    `rows` = sublane rows (in-channels + out-channels) that get double
    buffered per grid step.  Big tiles amortize the ~0.35us per-step overhead;
    the budget keeps the double-buffered blocks well inside the scoped-VMEM
    limit on v5e/v6e/v7x.  If n fits in one tile we use a full-extent block
    (allowed even when n is not a multiple of 128); otherwise the grid uses
    pl.cdiv and Pallas masks the ragged last block.
    """
    fit = budget_bytes // max(rows * 4 * 2, 1)
    tile_cap = min(cap, _round_down_128(fit)) if fit >= 128 else 128
    if n <= tile_cap:
        return n
    return tile_cap


def _attn_q_tile(n: int, ng: int, budget_bytes: int = 12 << 20,
                 cap: int = 512) -> int:
    """Query tile for the fused attention kernel.

    Bounds the (tq, ng) f32 softmax working set (~3 live copies: scores, exp,
    probs) so it stays comfortably inside v7x's 64 MiB physical VMEM while
    still amortizing grid-step overhead on v5e/v6e.
    """
    # TODO(synk): for very large ng a flash-style key-tiled online softmax
    # would be needed; the (tq, ng) block here assumes ng*tq*12B fits VMEM.
    fit = budget_bytes // (3 * 4 * max(ng, 1))
    tq = _round_down_128(min(cap, max(fit, 128)))
    if n <= tq:
        return n
    return tq


# ---------------------------------------------------------------------------
# Kernel 1: fused phi+g 1x1 conv projection (channel-first)
#   out = [phi_w; g_w] @ x_tile + [phi_b; g_b]
# ---------------------------------------------------------------------------
def _proj_cf_kernel(x_ref, w_ref, b_ref, o_ref):
    x = x_ref[0].astype(jnp.float32)        # (c, TN)   lanes = spatial
    wt = w_ref[...].astype(jnp.float32)     # (OC, c)
    bias = b_ref[...].astype(jnp.float32)   # (OC, 1)
    y = jnp.dot(wt, x, preferred_element_type=jnp.float32) + bias
    o_ref[0] = y.astype(o_ref.dtype)


def _project_cf(x_cf, w, bias):
    b, c, n = x_cf.shape
    oc = w.shape[0]
    tn = _proj_lane_tile(n, c + oc)
    grid = (b, pl.cdiv(n, tn))
    return pl.pallas_call(
        _proj_cf_kernel,
        out_shape=jax.ShapeDtypeStruct((b, oc, n), x_cf.dtype),
        grid_spec=pltpu.PrefetchScalarGridSpec(
            num_scalar_prefetch=0,
            grid=grid,
            in_specs=[
                pl.BlockSpec((1, c, tn), lambda bi, ni: (bi, 0, ni)),
                pl.BlockSpec((oc, c), lambda bi, ni: (0, 0)),
                pl.BlockSpec((oc, 1), lambda bi, ni: (0, 0)),
            ],
            out_specs=pl.BlockSpec((1, oc, tn), lambda bi, ni: (bi, 0, ni)),
        ),
        compiler_params=pltpu.CompilerParams(
            dimension_semantics=("parallel", "parallel")),
    )(x_cf, w, bias.reshape(oc, 1))


# ---------------------------------------------------------------------------
# Kernel 2: fused theta-proj + attention + LayerNorm + ReLU + W-proj + residual
# ---------------------------------------------------------------------------
def _fused_attention_kernel(x_ref, pg_ref, tw_ref, tb_ref, w2_ref, b2_ref,
                            o_ref, *, ic, eps, pv_bf16):
    x = x_ref[0].astype(jnp.float32)                  # (c, TQ)   lanes = queries
    tw = tw_ref[...].astype(jnp.float32)              # (ic, c)   1/sqrt(ic) folded
    tb = tb_ref[...].astype(jnp.float32)              # (ic, 1)
    th = jnp.dot(tw, x, preferred_element_type=jnp.float32) + tb   # (ic, TQ)

    ph = pg_ref[0, 0].astype(jnp.float32)             # (ic, Ng)  phi (pooled)
    gg = pg_ref[0, 1]                                  # (ic, Ng)  g   (pooled)

    # scores s[q, m] = sum_k theta[k, q] * phi[k, m]  (contract over sublanes)
    s = lax.dot_general(th, ph, (((0,), (0,)), ((), ())),
                        preferred_element_type=jnp.float32)        # (TQ, Ng)

    # softmax over keys (lane axis); EUP-bound, so use approx reciprocal
    m = jnp.max(s, axis=-1, keepdims=True)
    e = jnp.exp(s - m)
    p = e * pl.reciprocal(jnp.sum(e, axis=-1, keepdims=True), approx=True)

    # y[k, q] = sum_m g[k, m] * p[q, m]  -> lane-dense (ic, TQ).
    # p in [0,1]; cast to bf16 when the model runs in bf16 (f32 accumulate).
    pv_dtype = jnp.bfloat16 if pv_bf16 else jnp.float32
    y = lax.dot_general(gg.astype(pv_dtype), p.astype(pv_dtype),
                        (((1,), (1,)), ((), ())),
                        preferred_element_type=jnp.float32)

    # LayerNorm over channels (torch semantics: unbiased std, eps added to std).
    # NOTE: ic == 1 yields NaN, matching torch.std(unbiased=True) on 1 element.
    mean = jnp.mean(y, axis=0, keepdims=True)
    d = y - mean
    nrm = jnp.float32(1.0 / (ic - 1)) if ic > 1 else jnp.float32(jnp.nan)
    var = jnp.sum(d * d, axis=0, keepdims=True) * nrm
    y_ln = d * pl.reciprocal(jnp.sqrt(var) + jnp.float32(eps), approx=True)

    # Epilogue: ReLU + W 1x1 conv (eval-mode BatchNorm folded) + residual add.
    # TODO(synk): Dropout(p=0.2) is identity in inference mode.
    w2 = w2_ref[...].astype(jnp.float32)               # (c, ic)
    b2 = b2_ref[...].astype(jnp.float32)               # (c, 1)
    z = jnp.dot(w2, jnp.maximum(y_ln, jnp.float32(0.0)),
                preferred_element_type=jnp.float32) + b2 + x
    o_ref[0] = z.astype(o_ref.dtype)


def _fused_attention(x_cf, pg_pooled, tw, tb, w2, b2, *, eps, pv_bf16):
    b, c, n = x_cf.shape
    ic, ng = pg_pooled.shape[2], pg_pooled.shape[3]
    tq = _attn_q_tile(n, ng)
    grid = (b, pl.cdiv(n, tq))
    kernel = functools.partial(_fused_attention_kernel,
                               ic=ic, eps=eps, pv_bf16=pv_bf16)
    return pl.pallas_call(
        kernel,
        out_shape=jax.ShapeDtypeStruct((b, c, n), x_cf.dtype),
        grid_spec=pltpu.PrefetchScalarGridSpec(
            num_scalar_prefetch=0,
            grid=grid,
            in_specs=[
                pl.BlockSpec((1, c, tq), lambda bi, qi: (bi, 0, qi)),
                pl.BlockSpec((1, 2, ic, ng), lambda bi, qi: (bi, 0, 0, 0)),
                pl.BlockSpec((ic, c), lambda bi, qi: (0, 0)),
                pl.BlockSpec((ic, 1), lambda bi, qi: (0, 0)),
                pl.BlockSpec((c, ic), lambda bi, qi: (0, 0)),
                pl.BlockSpec((c, 1), lambda bi, qi: (0, 0)),
            ],
            out_specs=pl.BlockSpec((1, c, tq), lambda bi, qi: (bi, 0, qi)),
        ),
        compiler_params=pltpu.CompilerParams(
            dimension_semantics=("parallel", "parallel"),
            vmem_limit_bytes=48 * 1024 * 1024),
    )(x_cf, pg_pooled, tw, tb, w2, b2)


# ---------------------------------------------------------------------------
# Full forward pass
# ---------------------------------------------------------------------------
def non_local_block_forward(x_support, query, params, *, sub_sample=True,
                            ln_eps=1e-6, bn_eps=1e-5):
    b, c, t, h, w = x_support.shape
    ic = params["theta_w"].shape[0]
    n = t * h * w
    dt = x_support.dtype

    x_cf = x_support.reshape(b, c, n)      # free reshape, channel-first
    q_cf = query.reshape(b, c, n)

    # Fused phi+g projection over `query`: q_cf is read from HBM once.
    w_pg = jnp.concatenate([params["phi_w"], params["g_w"]], axis=0).astype(dt)
    b_pg = jnp.concatenate([params["phi_b"], params["g_b"]], axis=0).astype(dt)
    pg = _project_cf(q_cf, w_pg, b_pg)     # (b, 2*ic, n)

    if sub_sample:
        # TODO(synk): MaxPool3d((1,2,2)) via jnp reshape+max (needs even h, w);
        # could be fused into the projection kernel with strided lane maxes if
        # it ever shows up in the profile.
        pg = pg.reshape(b, 2 * ic, t, h // 2, 2, w // 2, 2).max(axis=(4, 6))
        ng = t * (h // 2) * (w // 2)
    else:
        ng = n
    pg = pg.reshape(b, 2, ic, ng)          # free reshape: [phi; g] stacked

    # Fold 1/sqrt(ic) into the theta 1x1 conv, and eval-mode BatchNorm into W.
    scale = 1.0 / math.sqrt(ic)
    tw = (params["theta_w"] * scale).astype(dt)
    tb = (params["theta_b"] * scale).reshape(ic, 1).astype(dt)
    bn_scale = params["bn_gamma"] / jnp.sqrt(params["bn_var"] + bn_eps)
    w2 = (params["W_w"] * bn_scale[:, None]).astype(dt)
    b2 = ((params["W_b"] - params["bn_mean"]) * bn_scale
          + params["bn_beta"]).reshape(c, 1).astype(dt)

    # bf16 PV matmul only when the model itself is bf16 (keeps f32 runs
    # bit-comparable to the f32 reference; accumulation is f32 either way).
    pv_bf16 = (dt == jnp.bfloat16)

    z_cf = _fused_attention(x_cf, pg, tw, tb, w2, b2,
                            eps=ln_eps, pv_bf16=pv_bf16)            # (b, c, n)
    return z_cf.reshape(b, c, t, h, w)


# ---------------------------------------------------------------------------
# Pure-JAX reference (mirrors the PyTorch forward, eval mode)
# ---------------------------------------------------------------------------
def _reference_forward(x_support, query, params, *, sub_sample=True,
                       ln_eps=1e-6, bn_eps=1e-5):
    hp = jax.lax.Precision.HIGHEST
    b, c, t, h, w = x_support.shape
    ic = params["theta_w"].shape[0]

    def conv1x1(x, wgt, bias):
        return (jnp.einsum("oc,bcthw->bothw", wgt, x, precision=hp)
                + bias[None, :, None, None, None])

    def maxpool_hw(v):
        bb, cc, tt, hh, ww = v.shape
        return v.reshape(bb, cc, tt, hh // 2, 2, ww // 2, 2).max(axis=(4, 6))

    g_x = conv1x1(query, params["g_w"], params["g_b"])
    phi_x = conv1x1(query, params["phi_w"], params["phi_b"])
    if sub_sample:
        g_x = maxpool_hw(g_x)
        phi_x = maxpool_hw(phi_x)
    g_x = g_x.reshape(b, ic, -1).transpose(0, 2, 1)            # (b, ng, ic)
    theta_x = conv1x1(x_support, params["theta_w"], params["theta_b"])
    theta_x = theta_x.reshape(b, ic, -1).transpose(0, 2, 1)    # (b, n, ic)
    phi_x = phi_x.reshape(b, ic, -1)                           # (b, ic, ng)

    f = jnp.einsum("bnc,bcm->bnm", theta_x, phi_x, precision=hp) / math.sqrt(ic)
    f = jax.nn.softmax(f, axis=-1)
    y = jnp.einsum("bnm,bmc->bnc", f, g_x, precision=hp)       # (b, n, ic)

    mean = y.mean(-1, keepdims=True)
    std = jnp.std(y, axis=-1, keepdims=True, ddof=1)           # unbiased, like torch.std
    y = (y - mean) / (std + ln_eps)

    y = y.transpose(0, 2, 1).reshape(b, ic, t, h, w)
    w_y = conv1x1(jax.nn.relu(y), params["W_w"], params["W_b"])
    scale = params["bn_gamma"] / jnp.sqrt(params["bn_var"] + bn_eps)
    w_y = ((w_y - params["bn_mean"][None, :, None, None, None])
           * scale[None, :, None, None, None]
           + params["bn_beta"][None, :, None, None, None])
    return w_y + x_support


if __name__ == "__main__":
    key = jax.random.PRNGKey(0)
    b, c, t, h, w = 2, 4, 4, 8, 8
    ic = max(c // 2, 1)
    ks = jax.random.split(key, 14)
    f32 = jnp.float32
    params = {
        "g_w":     0.5 * jax.random.normal(ks[0], (ic, c), f32),
        "g_b":     0.1 * jax.random.normal(ks[1], (ic,), f32),
        "theta_w": 0.5 * jax.random.normal(ks[2], (ic, c), f32),
        "theta_b": 0.1 * jax.random.normal(ks[3], (ic,), f32),
        "phi_w":   0.5 * jax.random.normal(ks[4], (ic, c), f32),
        "phi_b":   0.1 * jax.random.normal(ks[5], (ic,), f32),
        "W_w":     0.5 * jax.random.normal(ks[6], (c, ic), f32),
        "W_b":     0.1 * jax.random.normal(ks[7], (c,), f32),
        # The PyTorch module zero-inits BN gamma/beta (so W_y == 0 and z == x).
        # Non-trivial BN params here actually exercise the attention path;
        # the math is identical.
        "bn_gamma": 1.0 + 0.1 * jax.random.normal(ks[8], (c,), f32),
        "bn_beta":  0.1 * jax.random.normal(ks[9], (c,), f32),
        "bn_mean":  0.1 * jax.random.normal(ks[10], (c,), f32),
        "bn_var":   1.0 + 0.2 * jnp.abs(jax.random.normal(ks[11], (c,), f32)),
    }
    x_support = jax.random.normal(ks[12], (b, c, t, h, w), f32)
    query = jax.random.normal(ks[13], (b, c, t, h, w), f32)

    z = jax.block_until_ready(non_local_block_forward(x_support, query, params))
    z_ref = _reference_forward(x_support, query, params)

    assert z.shape == x_support.shape and z.dtype == x_support.dtype
    err = float(jnp.max(jnp.abs(z - z_ref)))
    assert err < 1e-2, f"max abs error vs reference: {err}"
    print("KERNEL_OK")
</pallas_src>

<mosaic_0001>
module attributes {stable_mosaic.version = 11 : i64} {
  func.func @_proj_cf_kernel(%arg0: i32, %arg1: i32, %arg2: memref<1x4x256xf32, #tpu.memory_space<vmem>>, %arg3: memref<4x4xf32, #tpu.memory_space<vmem>>, %arg4: memref<4x1xf32, #tpu.memory_space<vmem>>, %arg5: memref<1x4x256xf32, #tpu.memory_space<vmem>>) attributes {dimension_semantics = [#tpu.dimension_semantics<parallel>, #tpu.dimension_semantics<parallel>], iteration_bounds = array<i64: 2, 1>, scalar_prefetch = 0 : i64, scratch_operands = 0 : i64, tpu.core_type = #tpu.core_type<tc>, window_params = [{transform_indices = @transform_0, window_bounds = array<i64: 1, 4, 256>}, {pipeline_mode = #tpu.pipeline_mode<synchronous>, transform_indices = @transform_1, window_bounds = array<i64: 4, 4>}, {pipeline_mode = #tpu.pipeline_mode<synchronous>, transform_indices = @transform_2, window_bounds = array<i64: 4, 1>}, {transform_indices = @transform_3, window_bounds = array<i64: 1, 4, 256>}]} {
    %c0 = arith.constant 0 : index
    %c0_0 = arith.constant 0 : index
    %c0_1 = arith.constant 0 : index
    %0 = vector.load %arg2[%c0, %c0_0, %c0_1] : memref<1x4x256xf32, #tpu.memory_space<vmem>>, vector<1x4x256xf32>
    %1 = vector.shape_cast %0 : vector<1x4x256xf32> to vector<4x256xf32>
    %c0_2 = arith.constant 0 : index
    %c0_3 = arith.constant 0 : index
    %2 = vector.load %arg3[%c0_2, %c0_3] : memref<4x4xf32, #tpu.memory_space<vmem>>, vector<4x4xf32>
    %c0_4 = arith.constant 0 : index
    %c0_5 = arith.constant 0 : index
    %3 = vector.load %arg4[%c0_4, %c0_5] : memref<4x1xf32, #tpu.memory_space<vmem>>, vector<4x1xf32>
    %cst = arith.constant dense<0.000000e+00> : vector<4x256xf32>
    %4 = tpu.matmul %2, %1, %cst {dimension_numbers = #tpu.dot_dimension_numbers<[1], [0], [0], [1], [0, 0, 1, 1], [], []>} : vector<4x4xf32>, vector<4x256xf32>, vector<4x256xf32> -> vector<4x256xf32>
    %5 = vector.broadcast %3 : vector<4x1xf32> to vector<4x256xf32>
    %6 = arith.addf %4, %5 : vector<4x256xf32>
    %c0_6 = arith.constant 0 : index
    %c0_7 = arith.constant 0 : index
    %c0_8 = arith.constant 0 : index
    %7 = vector.load %arg5[%c0_6, %c0_7, %c0_8] : memref<1x4x256xf32, #tpu.memory_space<vmem>>, vector<1x4x256xf32>
    %8 = vector.shape_cast %7 : vector<1x4x256xf32> to vector<4x256xf32>
    %9 = vector.shape_cast %6 : vector<4x256xf32> to vector<1x4x256xf32>
    tpu.vector_store %arg5[%c0_6, %c0_7, %c0_8], %9 {strides = array<i32>} : memref<1x4x256xf32, #tpu.memory_space<vmem>>, vector<1x4x256xf32>,
    return
  }
  func.func @transform_0(%arg0: i32, %arg1: i32) -> (i32, i32, i32) {
    %c0_i32 = arith.constant 0 : i32
    %c0_i32_0 = arith.constant 0 : i32
    return %arg0, %c0_i32, %arg1 : i32, i32, i32
  }
  func.func @transform_1(%arg0: i32, %arg1: i32) -> (i32, i32) {
    %c0_i32 = arith.constant 0 : i32
    %c0_i32_0 = arith.constant 0 : i32
    %c0_i32_1 = arith.constant 0 : i32
    return %c0_i32, %c0_i32_0 : i32, i32
  }
  func.func @transform_2(%arg0: i32, %arg1: i32) -> (i32, i32) {
    %c0_i32 = arith.constant 0 : i32
    %c0_i32_0 = arith.constant 0 : i32
    %c0_i32_1 = arith.constant 0 : i32
    return %c0_i32, %c0_i32_0 : i32, i32
  }
  func.func @transform_3(%arg0: i32, %arg1: i32) -> (i32, i32, i32) {
    %c0_i32 = arith.constant 0 : i32
    %c0_i32_0 = arith.constant 0 : i32
    return %arg0, %c0_i32, %arg1 : i32, i32, i32
  }
}

</mosaic_0001>

<bundles_post_ra>
// kernel: tpu_custom_call.1
= control target key start
LH: loop header
LB: loop body
LE: loop exit
PB: predicated region body
PF: predicated region fallthrough
CT: control target
= control target key end

     0   :  { %8 = vsyncpa [#allocation3], 0  ;;  %s728_s0 = inlined_call_operand.hbm [shape: f32[2,4,256], index: 0, kind: input, shape index: {}]   ;;  %s729_s1 = inlined_call_operand.vmem [shape: f32[4,4], index: 1, kind: input, shape index: {}]   ;;  %s730_s2 = inlined_call_operand.vmem [shape: f32[4,1], index: 2, kind: input, shape index: {}]   ;;  %s731_s3 = inlined_call_operand.hbm [shape: f32[2,4,256], index: 3, kind: output, shape index: {}]  }
   0x1   :  { %10 = vsyncpa [#allocation3 + $0x1], 0 }
   0x2   :  { %11 = vsyncpa [#allocation4], 0 }
   0x3   :  { %13 = vsyncpa [#allocation4 + $0x1], 0  ;;  %s599_s12 = smov 0   ;;  %s601_s13 = smov 0  }
   0x4   :  { %s603_s14 = smov 0   ;;  %s605_s15 = smov 0  }
   0x5   :  { %s607_s16 = smov 0   ;;  %s609_s17 = smov 0  }
   0x6 LB: > { %s379_s18 = sadd.s32 4294967295, %s576_s17   ;;  %s380_s19 = sadd.s32 4294967294, %s576_s17   ;;  %s576_s17 = sphi %s609_s17, %s19_s17   ;;  %s572_s16 = sphi %s607_s16, %s740_s16   ;;  %s568_s15 = sphi %s605_s15, %s739_s15   ;;  %s564_s14 = sphi %s603_s14, %s738_s14   ;;  %s560_s13 = sphi %s601_s13, %s737_s13   ;;  %s556_s12 = sphi %s599_s12, %s736_s12  }
   0x7   : > { %s31_s20 = sadd.s32 1, %s572_s16  ;;  %s40_s21 = sadd.s32 1, %s564_s14 }
   0x8   : > { %p33_p0 = scmp.ge.s32.totalorder %s31_s20, 2  ;;  %p47_p1 = scmp.ne.s32.totalorder %s564_s14, %s560_s13 }
   0x9   : > { %p48_p2 = scmp.eq.s32.totalorder %s576_s17, 0  ;;  %p53_p3 = scmp.ne.s32.totalorder %s560_s13, %s556_s12 }
   0xa   : > { %s742_s20 = smov (%p33_p0, %s31_s20), 0  ;;  %p54_p5 = scmp.eq.s32.totalorder %s379_s18, 0 }
   0xb   : > { %p640_p4 = por %p48_p2, %p47_p1  ;;  %s35_s23 = ssub.s32 %s572_s16, %s742_s20 }
   0xc   : > { %p121_p6 = scmp.eq.s32.totalorder %s379_s18, 1  ;;  %p38_p7 = scmp.eq.s32.totalorder %s35_s23, 0 }
   0xd   : > { %p646_p8 = por %p54_p5, %p53_p3  ;;  %p127_p10 = scmp.eq.s32.totalorder %s380_s19, 1 }
   0xe   : > { %p650_p9 = por %p121_p6, %p47_p1  ;;  %p382_p12 = scmp.ge.s32.totalorder %s576_s17, 2 }
   0xf   : > { %s655_s26 = scalar_select %p38_p7, %s564_s14, %s40_s21  }
  0x10   : > { %p657_p11 = por %p127_p10, %p53_p3  ;;  %p412_p13 = scmp.lt.s32.totalorder %s576_s17, 2 }
  0x11   : > { %s153_s28 = sand.u32 1, %s564_s14   ;;  %s398_s30 = sshll.u32 %s572_s16, 3 }
  0x12   : > { %s383_s29 = sshll.u32 %s153_s28, 3  ;;  %s164_s6 = scalar_lea.hbm %s728_s0, %s398_s30 }
  0x13   : > { %s157_s7 = scalar_lea.vmem [#allocation2], %s383_s29  ;;  %s166_s9 = sshll.u32 %s164_s6, 4  ;;  %s167_s9 = int_to_ptr.hbm [resolvable:$true] %s166_s9 }
  0x14   : > { %s168_s8 = sshll.u32 %s157_s7, 4  ;;  %p405_p0 = pnand %p412_p13, %p640_p4  ;;  %s169_s8 = int_to_ptr.vmem [resolvable:$true] %s168_s8 }
  0x15   : > { %p386_p1 = scmp.ge.s32.totalorder %s576_s17, 1  ;;  %p173_p2 = scmp.lt.s32.totalorder %s576_s17, 3 }
  0x16   : > { %s154_s10 = scalar_lea.sflag [#allocation3], %s153_s28 }
  0x17   : > { %407 = dma.hbm_to_vmem [thread:$0]  (!%p405_p0), %s167_s9, 128, %s169_s8, %s154_s10  }
  0x18   : > { %p174_p3 = pnand %p386_p1, %p173_p2 }
  0x19   : > { %s673_s11 = sand.u32 (!%p174_p3), 1, %s560_s13  }
  0x1a   : > { %177 = sbr.rel (%p174_p3) target bundleno = 176 (0xb0), region = 32  ;;  %s387_s18 = sshll.u32 (!%p174_p3), %s673_s11, 3 }
  0x1b   : > { %s180_s19 = scalar_lea.sflag (!%p174_p3), [#allocation3], %s673_s11  ;;  %s183_s21 = scalar_lea.vmem (!%p174_p3), [#allocation2], %s387_s18 }
  0x1f   : > { %547 = dma.done.wait (%p646_p8), %s180_s19, 128  }
  0x20   : > { %549 = vsyncadd (%p646_p8), %s180_s19, 4294967168  ;;  %v578_v0 = vmov 0   ;;  %v209_v1 = vld [vmem:[%s183_s21] sm:$0xff]  ;;  %v211_v2 = vld [vmem:[%s730_s2] sm:$0xf]  ;;  %vm225_vm0 = vcmask 1043456  }
  0x21   : > { %463 = vset.pattern.permute.xlu0 %v578_v0  ;;  %218 = vst [vmem:[#allocation1] ss:$2 sm:$0xff] %v209_v1  ;;  %v210_v3 = vld [vmem:[%s729_s1] sm:$0xf]  ;;  %vm221_vm1 = vcmask 31744   ;;  %s399_s24 = sshll.u32 %s568_s15, 3 }
  0x22   : > { %214 = vperm.xlu0 %463, %v211_v2   ;;  %s290_s5 = scalar_lea.hbm %s731_s3, %s399_s24  ;;  %s206_s6 = scalar_lea.vmem [#allocation5], %s387_s18 }
  0x23   : > { %s292_s7 = sshll.u32 %s206_s6, 4  ;;  %s294_s8 = sshll.u32 %s290_s5, 4  ;;  %s293_s7 = int_to_ptr.vmem [resolvable:$true] %s292_s7  ;;  %s295_s8 = int_to_ptr.hbm [resolvable:$true] %s294_s8 }
  0x24   : > { %s277_s15 = scalar_lea.sflag [#allocation4], %s673_s11  ;;  %s508_s9 = sshra.s32 %s295_s8, 4  ;;  %s509_s9 = int_to_ptr.hbm [resolvable:$true] %s508_s9 }
  0x25   : > { %s510_s10 = scalar_lea.hbm %s509_s9, 8  ;;  %s514_s18 = scalar_lea.hbm %s731_s3, 16 }
  0x26   : > { %p511_p4 = scmp.ne.s32.totalorder %s509_s9, %s510_s10  ;;  %p515_p7 = scmp.lt.s32.totalorder %s509_s9, %s731_s3 }
  0x27   : > { %p516_p8 = scmp.lt.s32.totalorder %s514_s18, %s510_s10 }
  0x28   : > { %v219_v4 = vld.sshfl [vmem:[#allocation1] sm:$0xff pattern:$0x75316420]  ;;  %v220_v5 = vld.sshfl [vmem:[#allocation1 + $0x8] sm:$0xff pattern:$0x75316420]  ;;  %p512_p5 = pnand %p511_p4, %p650_p9 }
  0x29   : > { %389 = vmatpush.msk.msra.mxu0 %vm225_vm0, %v219_v4  ;;  %391 = vmatpush.msk.msra.mxu1 %vm225_vm0, %v220_v5  ;;  %p517_p10 = por %p516_p8, %p515_p7 }
  0x2a   : > { %390 = vmatmul.msk.f32.vlgmr.msra.gmra.mxu0 %vm221_vm1, %v210_v3  ;;  %392 = vmatmul.msk.f32.vlgmr.msra.gmra.mxu1 %vm221_vm1, %v210_v3  ;;  %p513_p6 = pneg %p512_p5 }
  0x2c   : > { %p518_p13 = pnand %p517_p10, %p513_p6 }
  0x94   : > { %v215_v6 = vpop.permute.xlu0 %214 }
  0xa7   : > { %v247_v7 = vpop.f32.mrf.mxu0  ;;  %v267_v8 = vpop.f32.mrf.mxu1 }
  0xa8   : > { %v268_v9 = vadd.f32 %v267_v8, %v215_v6  ;;  %v248_v10 = vadd.f32 %v247_v7, %v215_v6 }
  0xaa   : > { %v272_v11 = vrot.slane %v268_v9, 4 }
  0xac   : > { %v273_v12 = vsel %vm225_vm0, %v248_v10, %v272_v11 }
  0xad   : > { %275 = vst [vmem:[%s206_s6] sm:$0xff] %v273_v12 }
  0xae   : > { %521 = shalt.err (!%p518_p13)
}
  0xaf   : > { %402 = dma.vmem_to_hbm [thread:$0]  (%p650_p9), %s293_s7, 128, %s295_s8, %s277_s15  }
  0xb0 PF: > { %s306_s11 = sand.u32 1, %s556_s12   ;;  %p409_p0 = pnand %p382_p12, %p657_p11 }
  0xb1   : > { %s307_s28 = scalar_lea.sflag [#allocation4], %s306_s11 }
  0xb2   : > { %p410_p1 = pneg %p409_p0 }
  0xb4   : > { %551 = dma.done.wait (%p410_p1), %s307_s28, 128  }
  0xb5   : > { %553 = vsyncadd (%p410_p1), %s307_s28, 4294967168  ;;  %s19_s17 = sadd.s32 1, %s576_s17   ;;  %s736_s12 = smov %s560_s13 }
  0xb6   : > { %p16_p2 = scmp.ge.s32.totalorder %s19_s17, 4   ;;  %s737_s13 = smov %s564_s14 }
  0xb7   : > { %s738_s14 = smov %s655_s26  ;;  %s739_s15 = smov %s572_s16 }
  0xb8   : > { %s740_s16 = smov %s742_s20  ;;  %18 = sbr.rel (!%p16_p2) target bundleno = 6 (0x6), region = 77 }
  0xbd   :  { %313 = vsyncpa [#allocation3], 1 }
  0xbe   :  { %315 = vsyncpa [#allocation3 + $0x1], 1 }
  0xbf   :  { %316 = vsyncpa [#allocation4], 1 }
  0xc0   :  { %318 = vsyncpa [#allocation4 + $0x1], 1 }

</bundles_post_ra>
